<compile_context>
chip_gen: v6e
topology: v6e:2x2x1
jax: 0.10.0
libtpu: 0.0.40
codegen_flags: <defaults>
</compile_context>

<pallas_src>
import functools

import jax
import jax.numpy as jnp
from jax.experimental import pallas as pl
from jax.experimental.pallas import tpu as pltpu

KERNEL_SIZE = 7
PAD = 3                      # Conv1d padding for kernel_size == 7
_LANE = 128                  # TPU lane width
_SUBLANE_BYTES = 32          # bytes per packed sublane row group (8xf32 / 16xbf16)


def _vmem_limit_and_budget():
    """Generation-aware VMEM limit and per-block x budget, in bytes."""
    cap = 0
    try:                                          # preferred: ask the hardware
        cap = int(getattr(pltpu.get_tpu_info(), "vmem_capacity_bytes", 0) or 0)
    except Exception:
        cap = 0
    if cap <= 0:                                  # fallback: device_kind sniffing
        try:
            kind = jax.devices()[0].device_kind.lower()
        except Exception:
            kind = ""
        big = any(tag in kind for tag in ("v4", "v5", "v6"))
        cap = (128 << 20) if big else (64 << 20)  # v7x / unknown: 64 MiB per TC
    limit = min(cap * 3 // 4, 100 << 20)          # ~48 MiB (v7x) / ~96 MiB (v5e/v6e)
    budget = limit // 5                           # in+out double-buffered (~4x) + slack
    return limit, budget


_VMEM_LIMIT_BYTES, _BLOCK_BUDGET_BYTES = _vmem_limit_and_budget()


def _spatial_attention_kernel(w_ref, x_ref, o_ref, *, use_mxu_sum):
    """One grid step: a (b_tile, E, T) block of x (full E, full T).

    w_ref : SMEM (2*KERNEL_SIZE,) f32 conv taps; taps 0..6 are the "avg"
            channel and already carry the 1/E factor, taps 7..13 are the "max"
            channel.
    x_ref / o_ref : VMEM (b_tile, E, T) in the input dtype.
    """
    b_tile, e, t = x_ref.shape
    x = x_ref[...]

    # --- channel reductions over E (the sublane axis), f32 results ----------
    if use_mxu_sum:
        # Channel SUM on the otherwise-idle MXU: (8, E) @ (E, T) per batch row
        # (8 LHS rows keep the matmul sublane-aligned; only row 0 is used).
        ones = jnp.ones((b_tile, 8, e), dtype=x.dtype)
        ssum3 = jax.lax.dot_general(
            ones, x,
            dimension_numbers=(((2,), (1,)), ((0,), (0,))),
            preferred_element_type=jnp.float32)            # (b_tile, 8, T)
        ssum = ssum3[:, 0, :]                              # (b_tile, T) f32
    else:
        ssum = jnp.sum(x, axis=1, dtype=jnp.float32)       # (b_tile, T) f32

    mx = jnp.max(x, axis=1).astype(jnp.float32)            # (b_tile, T) f32

    # --- Conv1d(2 -> 1, k=7, pad=3, bias=False) on the reduced rows ---------
    # A PAD-wide zero halo on both lane edges implements the conv's zero
    # padding; per-tap slices are lane shifts on the tiny reduced signal only.
    zhalo = jnp.zeros((b_tile, PAD), jnp.float32)
    sum_s = jnp.concatenate([zhalo, ssum, zhalo], axis=1)  # (b_tile, T + 6)
    max_s = jnp.concatenate([zhalo, mx, zhalo], axis=1)    # (b_tile, T + 6)

    # Hoist all 14 SMEM scalar reads out of the tap loop.
    w_avg = [w_ref[k] for k in range(KERNEL_SIZE)]
    w_max = [w_ref[KERNEL_SIZE + k] for k in range(KERNEL_SIZE)]

    acc = jnp.zeros((b_tile, t), jnp.float32)
    for k in range(KERNEL_SIZE):                           # 7 taps, static unroll
        acc = acc + w_avg[k] * sum_s[:, k:k + t] + w_max[k] * max_s[:, k:k + t]

    att = jax.nn.sigmoid(acc)                              # (b_tile, T) f32

    # Broadcast multiply over channels; stays in the input dtype (bf16 in ->
    # bf16 out; small precision delta vs. the f32-promoting reference).
    o_ref[...] = x * att[:, None, :].astype(x.dtype)


def _pick_b_tile(batch, e, t, itemsize):
    """Largest batch tile that (a) fits the VMEM block budget and (b) leaves at
    least min(batch, 4) grid steps so both v7x TensorCores get work."""
    sub = max(1, _SUBLANE_BYTES // itemsize)          # 8 (f32) / 16 (bf16) rows/tile
    row_bytes = (pl.cdiv(e, sub) * sub) * (pl.cdiv(t, _LANE) * _LANE) * itemsize
    b_fit = max(1, _BLOCK_BUDGET_BYTES // row_bytes)
    min_steps = min(batch, 4)
    return int(max(1, min(batch, b_fit, pl.cdiv(batch, min_steps))))


@jax.jit
def spatial_attention(x, conv_weight):
    """x: (B, E, T); conv_weight: (1, 2, 7) as in nn.Conv1d(2, 1, 7, padding=3, bias=False)."""
    B, E, T = x.shape
    itemsize = jnp.dtype(x.dtype).itemsize

    # Fold 1/E into the avg-channel taps so the kernel only needs the channel
    # SUM (cheaper, and it lets the sum ride the MXU).
    w = conv_weight.reshape(2, KERNEL_SIZE).astype(jnp.float32)
    w_flat = jnp.concatenate([w[0] / E, w[1]])            # (14,)

    b_tile = _pick_b_tile(B, E, T, itemsize)
    grid = (pl.cdiv(B, b_tile),)                          # partial final block is fine
    use_mxu_sum = E >= 8                                  # MXU offload for real-sized E

    kernel = functools.partial(_spatial_attention_kernel, use_mxu_sum=use_mxu_sum)

    grid_spec = pltpu.PrefetchScalarGridSpec(
        num_scalar_prefetch=1,
        grid=grid,
        # Last-two block dims equal the full (E, T) array dims, so ragged T is
        # handled in-kernel (masked tail stores) with no host-side pad/slice.
        in_specs=[pl.BlockSpec((b_tile, E, T), lambda i, _w: (i, 0, 0))],
        out_specs=pl.BlockSpec((b_tile, E, T), lambda i, _w: (i, 0, 0)),
    )

    # TODO(synk): add a T-tiled grid (PAD-wide halo carry) for shapes where a
    # single (E, T) row exceeds the per-block VMEM budget (hits v7x first).
    return pl.pallas_call(
        kernel,
        out_shape=jax.ShapeDtypeStruct((B, E, T), x.dtype),
        grid_spec=grid_spec,
        compiler_params=pltpu.CompilerParams(
            dimension_semantics=("parallel",),
            vmem_limit_bytes=_VMEM_LIMIT_BYTES,
        ),
    )(w_flat, x)


def _reference(x, conv_weight):
    """Pure-JAX reference mirroring the PyTorch forward."""
    avg = jnp.mean(x, axis=1, keepdims=True)      # (B, 1, T)
    mx = jnp.max(x, axis=1, keepdims=True)        # (B, 1, T)
    y = jnp.concatenate([avg, mx], axis=1)        # (B, 2, T)
    y = jax.lax.conv_general_dilated(
        y.astype(jnp.float32),
        conv_weight.astype(jnp.float32),          # (out=1, in=2, k=7)
        window_strides=(1,),
        padding=((PAD, PAD),),
        dimension_numbers=("NCH", "OIH", "NCH"),
    )                                             # (B, 1, T)
    return x * jax.nn.sigmoid(y)


if __name__ == "__main__":
    key = jax.random.PRNGKey(0)
    kx, kw = jax.random.split(key)

    B, E, T = 2, 4, 16
    x = jax.random.normal(kx, (B, E, T), dtype=jnp.float32)

    # Deterministic synthetic conv weight, shape (out=1, in=2, k=7) like nn.Conv1d(2, 1, 7).
    fan_in = 2 * KERNEL_SIZE
    bound = 1.0 / (fan_in ** 0.5)
    conv_weight = jax.random.uniform(
        kw, (1, 2, KERNEL_SIZE), dtype=jnp.float32, minval=-bound, maxval=bound
    )

    out = spatial_attention(x, conv_weight)
    out = jax.block_until_ready(out)

    ref = _reference(x, conv_weight)
    assert out.shape == (B, E, T)
    assert jnp.allclose(out, ref, atol=1e-5, rtol=1e-5), "mismatch vs reference"

    print("KERNEL_OK")
</pallas_src>

<mosaic_0001>
module attributes {stable_mosaic.version = 11 : i64} {
  func.func @_spatial_attention_kernel(%arg0: i32, %arg1: memref<14xf32, #tpu.memory_space<smem>>, %arg2: memref<1x4x16xf32, #tpu.memory_space<vmem>>, %arg3: memref<1x4x16xf32, #tpu.memory_space<vmem>>) attributes {dimension_semantics = [#tpu.dimension_semantics<parallel>], iteration_bounds = array<i64: 2>, scalar_prefetch = 1 : i64, scratch_operands = 0 : i64, tpu.core_type = #tpu.core_type<tc>, window_params = [{transform_indices = @transform_0, window_bounds = array<i64: 1, 4, 16>}, {transform_indices = @transform_1, window_bounds = array<i64: 1, 4, 16>}]} {
    %c0 = arith.constant 0 : index
    %c0_0 = arith.constant 0 : index
    %c0_1 = arith.constant 0 : index
    %0 = vector.load %arg2[%c0, %c0_0, %c0_1] : memref<1x4x16xf32, #tpu.memory_space<vmem>>, vector<1x4x16xf32>
    %cst = arith.constant dense<0.000000e+00> : vector<1x16xf32>
    %1 = vector.multi_reduction <add>, %0, %cst [1] : vector<1x4x16xf32> to vector<1x16xf32>
    %cst_2 = arith.constant dense<0xFF800000> : vector<1x16xf32>
    %2 = vector.multi_reduction <maximumf>, %0, %cst_2 [1] : vector<1x4x16xf32> to vector<1x16xf32>
    %cst_3 = arith.constant 0.000000e+00 : f32
    %3 = vector.broadcast %cst_3 : f32 to vector<1x3xf32>
    %4 = tpu.concatenate %3, %1, %3 in 1 : vector<1x3xf32>, vector<1x16xf32>, vector<1x3xf32> -> vector<1x22xf32>
    %5 = tpu.concatenate %3, %2, %3 in 1 : vector<1x3xf32>, vector<1x16xf32>, vector<1x3xf32> -> vector<1x22xf32>
    %c0_4 = arith.constant 0 : index
    %6 = memref.load %arg1[%c0_4] : memref<14xf32, #tpu.memory_space<smem>>
    %c1 = arith.constant 1 : index
    %7 = memref.load %arg1[%c1] : memref<14xf32, #tpu.memory_space<smem>>
    %c2 = arith.constant 2 : index
    %8 = memref.load %arg1[%c2] : memref<14xf32, #tpu.memory_space<smem>>
    %c3 = arith.constant 3 : index
    %9 = memref.load %arg1[%c3] : memref<14xf32, #tpu.memory_space<smem>>
    %c4 = arith.constant 4 : index
    %10 = memref.load %arg1[%c4] : memref<14xf32, #tpu.memory_space<smem>>
    %c5 = arith.constant 5 : index
    %11 = memref.load %arg1[%c5] : memref<14xf32, #tpu.memory_space<smem>>
    %c6 = arith.constant 6 : index
    %12 = memref.load %arg1[%c6] : memref<14xf32, #tpu.memory_space<smem>>
    %c7 = arith.constant 7 : index
    %13 = memref.load %arg1[%c7] : memref<14xf32, #tpu.memory_space<smem>>
    %c8 = arith.constant 8 : index
    %14 = memref.load %arg1[%c8] : memref<14xf32, #tpu.memory_space<smem>>
    %c9 = arith.constant 9 : index
    %15 = memref.load %arg1[%c9] : memref<14xf32, #tpu.memory_space<smem>>
    %c10 = arith.constant 10 : index
    %16 = memref.load %arg1[%c10] : memref<14xf32, #tpu.memory_space<smem>>
    %c11 = arith.constant 11 : index
    %17 = memref.load %arg1[%c11] : memref<14xf32, #tpu.memory_space<smem>>
    %c12 = arith.constant 12 : index
    %18 = memref.load %arg1[%c12] : memref<14xf32, #tpu.memory_space<smem>>
    %c13 = arith.constant 13 : index
    %19 = memref.load %arg1[%c13] : memref<14xf32, #tpu.memory_space<smem>>
    %cst_5 = arith.constant 0.000000e+00 : f32
    %20 = vector.broadcast %cst_5 : f32 to vector<1x16xf32>
    %21 = vector.extract_strided_slice %4 {offsets = [0, 0], sizes = [1, 16], strides = [1, 1]} : vector<1x22xf32> to vector<1x16xf32>
    %22 = vector.broadcast %6 : f32 to vector<1x16xf32>
    %23 = arith.mulf %22, %21 : vector<1x16xf32>
    %24 = arith.addf %20, %23 : vector<1x16xf32>
    %25 = vector.extract_strided_slice %5 {offsets = [0, 0], sizes = [1, 16], strides = [1, 1]} : vector<1x22xf32> to vector<1x16xf32>
    %26 = vector.broadcast %13 : f32 to vector<1x16xf32>
    %27 = arith.mulf %26, %25 : vector<1x16xf32>
    %28 = arith.addf %24, %27 : vector<1x16xf32>
    %29 = vector.extract_strided_slice %4 {offsets = [0, 1], sizes = [1, 16], strides = [1, 1]} : vector<1x22xf32> to vector<1x16xf32>
    %30 = vector.broadcast %7 : f32 to vector<1x16xf32>
    %31 = arith.mulf %30, %29 : vector<1x16xf32>
    %32 = arith.addf %28, %31 : vector<1x16xf32>
    %33 = vector.extract_strided_slice %5 {offsets = [0, 1], sizes = [1, 16], strides = [1, 1]} : vector<1x22xf32> to vector<1x16xf32>
    %34 = vector.broadcast %14 : f32 to vector<1x16xf32>
    %35 = arith.mulf %34, %33 : vector<1x16xf32>
    %36 = arith.addf %32, %35 : vector<1x16xf32>
    %37 = vector.extract_strided_slice %4 {offsets = [0, 2], sizes = [1, 16], strides = [1, 1]} : vector<1x22xf32> to vector<1x16xf32>
    %38 = vector.broadcast %8 : f32 to vector<1x16xf32>
    %39 = arith.mulf %38, %37 : vector<1x16xf32>
    %40 = arith.addf %36, %39 : vector<1x16xf32>
    %41 = vector.extract_strided_slice %5 {offsets = [0, 2], sizes = [1, 16], strides = [1, 1]} : vector<1x22xf32> to vector<1x16xf32>
    %42 = vector.broadcast %15 : f32 to vector<1x16xf32>
    %43 = arith.mulf %42, %41 : vector<1x16xf32>
    %44 = arith.addf %40, %43 : vector<1x16xf32>
    %45 = vector.extract_strided_slice %4 {offsets = [0, 3], sizes = [1, 16], strides = [1, 1]} : vector<1x22xf32> to vector<1x16xf32>
    %46 = vector.broadcast %9 : f32 to vector<1x16xf32>
    %47 = arith.mulf %46, %45 : vector<1x16xf32>
    %48 = arith.addf %44, %47 : vector<1x16xf32>
    %49 = vector.extract_strided_slice %5 {offsets = [0, 3], sizes = [1, 16], strides = [1, 1]} : vector<1x22xf32> to vector<1x16xf32>
    %50 = vector.broadcast %16 : f32 to vector<1x16xf32>
    %51 = arith.mulf %50, %49 : vector<1x16xf32>
    %52 = arith.addf %48, %51 : vector<1x16xf32>
    %53 = vector.extract_strided_slice %4 {offsets = [0, 4], sizes = [1, 16], strides = [1, 1]} : vector<1x22xf32> to vector<1x16xf32>
    %54 = vector.broadcast %10 : f32 to vector<1x16xf32>
    %55 = arith.mulf %54, %53 : vector<1x16xf32>
    %56 = arith.addf %52, %55 : vector<1x16xf32>
    %57 = vector.extract_strided_slice %5 {offsets = [0, 4], sizes = [1, 16], strides = [1, 1]} : vector<1x22xf32> to vector<1x16xf32>
    %58 = vector.broadcast %17 : f32 to vector<1x16xf32>
    %59 = arith.mulf %58, %57 : vector<1x16xf32>
    %60 = arith.addf %56, %59 : vector<1x16xf32>
    %61 = vector.extract_strided_slice %4 {offsets = [0, 5], sizes = [1, 16], strides = [1, 1]} : vector<1x22xf32> to vector<1x16xf32>
    %62 = vector.broadcast %11 : f32 to vector<1x16xf32>
    %63 = arith.mulf %62, %61 : vector<1x16xf32>
    %64 = arith.addf %60, %63 : vector<1x16xf32>
    %65 = vector.extract_strided_slice %5 {offsets = [0, 5], sizes = [1, 16], strides = [1, 1]} : vector<1x22xf32> to vector<1x16xf32>
    %66 = vector.broadcast %18 : f32 to vector<1x16xf32>
    %67 = arith.mulf %66, %65 : vector<1x16xf32>
    %68 = arith.addf %64, %67 : vector<1x16xf32>
    %69 = vector.extract_strided_slice %4 {offsets = [0, 6], sizes = [1, 16], strides = [1, 1]} : vector<1x22xf32> to vector<1x16xf32>
    %70 = vector.broadcast %12 : f32 to vector<1x16xf32>
    %71 = arith.mulf %70, %69 : vector<1x16xf32>
    %72 = arith.addf %68, %71 : vector<1x16xf32>
    %73 = vector.extract_strided_slice %5 {offsets = [0, 6], sizes = [1, 16], strides = [1, 1]} : vector<1x22xf32> to vector<1x16xf32>
    %74 = vector.broadcast %19 : f32 to vector<1x16xf32>
    %75 = arith.mulf %74, %73 : vector<1x16xf32>
    %76 = arith.addf %72, %75 : vector<1x16xf32>
    %77 = arith.negf %76 : vector<1x16xf32>
    %78 = math.exp %77 : vector<1x16xf32>
    %cst_6 = arith.constant 1.000000e+00 : f32
    %79 = vector.broadcast %cst_6 : f32 to vector<1x16xf32>
    %80 = arith.addf %79, %78 : vector<1x16xf32>
    %81 = arith.divf %79, %80 : vector<1x16xf32>
    %82 = vector.shape_cast %81 : vector<1x16xf32> to vector<1x1x16xf32>
    %83 = vector.broadcast %82 : vector<1x1x16xf32> to vector<1x4x16xf32>
    %84 = arith.mulf %0, %83 : vector<1x4x16xf32>
    %c0_7 = arith.constant 0 : index
    %c0_8 = arith.constant 0 : index
    %c0_9 = arith.constant 0 : index
    %85 = vector.load %arg3[%c0_7, %c0_8, %c0_9] : memref<1x4x16xf32, #tpu.memory_space<vmem>>, vector<1x4x16xf32>
    tpu.vector_store %arg3[%c0_7, %c0_8, %c0_9], %84 {strides = array<i32>} : memref<1x4x16xf32, #tpu.memory_space<vmem>>, vector<1x4x16xf32>,
    return
  }
  func.func @transform_0(%arg0: i32, %arg1: memref<14xf32, #tpu.memory_space<smem>>) -> (i32, i32, i32) {
    %c0_i32 = arith.constant 0 : i32
    %c0_i32_0 = arith.constant 0 : i32
    %c0_i32_1 = arith.constant 0 : i32
    return %arg0, %c0_i32, %c0_i32_0 : i32, i32, i32
  }
  func.func @transform_1(%arg0: i32, %arg1: memref<14xf32, #tpu.memory_space<smem>>) -> (i32, i32, i32) {
    %c0_i32 = arith.constant 0 : i32
    %c0_i32_0 = arith.constant 0 : i32
    %c0_i32_1 = arith.constant 0 : i32
    return %arg0, %c0_i32, %c0_i32_0 : i32, i32, i32
  }
}

</mosaic_0001>

<bundles_post_ra>
// kernel: spatial_attention.1
= control target key start
LH: loop header
LB: loop body
LE: loop exit
PB: predicated region body
PF: predicated region fallthrough
CT: control target
= control target key end

     0   :  { %s630_s0 = inlined_call_operand.vmem [shape: f32[14], index: 0, kind: input, shape index: {}]   ;;  %s631_s1 = inlined_call_operand.vmem [shape: f32[2,4,16], index: 1, kind: input, shape index: {}]   ;;  %s632_s2 = inlined_call_operand.hbm [shape: f32[2,4,16], index: 2, kind: output, shape index: {}]  }
   0x1   :  { %s7_s11 = sshll.u32 %s630_s0, 4  ;;  %s8_s11 = int_to_ptr.vmem [resolvable:$true] %s7_s11 }
   0x2   :  { %s413_s12 = scalar_lea.vmem %s8_s11, 16  ;;  %p418_p1 = scmp.lt.s32.totalorder %s8_s11, %s8_s11 }
   0x3   :  { %p414_p0 = scmp.ne.s32.totalorder %s8_s11, %s413_s12  ;;  %p419_p2 = scmp.lt.s32.totalorder %s413_s12, %s413_s12 }
   0x5   :  { %p420_p3 = por %p419_p2, %p418_p1 }
   0x7   :  { %p421_p4 = pnand %p420_p3, %p414_p0 }
   0x9   :  { %424 = shalt.err (!%p421_p4)  }
   0xa   :  { %s489_s13 = smov [#allocation3]  }
   0xb   :  { %10 = dma.vmem_to_smem %s8_s11, 16, %s489_s13, [#allocation2] }
   0xc   :  { %467 = dma.done.wait [#allocation2], 16 }
   0xd   :  { %468 = vsyncadd [#allocation2], 4294967280 }
   0xe   :  { %12 = sfence }
   0xf   :  { %13 = vsyncpa [#allocation5], 0 }
  0x10   :  { %15 = vsyncpa [#allocation5 + $0x1], 0  ;;  %s516_s14 = smov 0   ;;  %s518_s15 = smov 0  }
  0x11   :  { %s520_s0 = smov 0   ;;  %s522_s16 = smov 0  }
  0x12 LB: > { %s537_s17 = sadd.s32 4294967295, %s487_s16   ;;  %s338_s18 = sadd.s32 4294967294, %s487_s16   ;;  %s487_s16 = sphi %s522_s16, %s638_s16   ;;  %s483_s0 = sphi %s520_s0, %s637_s0   ;;  %s479_s15 = sphi %s518_s15, %s636_s15   ;;  %s475_s14 = sphi %s516_s14, %s635_s14  }
  0x13   : > { %s541_s19 = sadd.s32 1, %s487_s16   ;;  %s54_s20 = sadd.s32 1, %s483_s0 }
  0x14   : > { %s51_s21 = ssub.s32 %s487_s16, %s541_s19  ;;  %p64_p5 = scmp.ne.s32.totalorder %s483_s0, %s479_s15 }
  0x15   : > { %p52_p6 = scmp.eq.s32.totalorder %s51_s21, 0  ;;  %p65_p7 = scmp.eq.s32.totalorder %s537_s17, 1 }
  0x16   : > { %p70_p8 = scmp.ne.s32.totalorder %s479_s15, %s475_s14  ;;  %p71_p9 = scmp.eq.s32.totalorder %s338_s18, 1 }
  0x17   : > { %s552_s22 = scalar_select %p52_p6, %s483_s0, %s54_s20  }
  0x18   : > { %p554_p10 = por %p65_p7, %p64_p5  ;;  %p558_p11 = por %p71_p9, %p70_p8 }
  0x19   : > { %p341_p12 = scmp.ge.s32.totalorder %s487_s16, 1  ;;  %p96_p13 = scmp.lt.s32.totalorder %s487_s16, 3 }
  0x1b   : > { %p97_p0 = pnand %p341_p12, %p96_p13 }
  0x1c   : > { %p115_p1 = scmp.lt.s32.totalorder (!%p97_p0), %s537_s17, 1  ;;  %s490_s30 = smov (!%p97_p0), 3  }
  0x1d   : > { %100 = sbr.rel (%p97_p0) target bundleno = 361 (0x169), region = 24  ;;  %s345_s3 = sld [smem:[#allocation3 + $0x2]] (!%p97_p0) }
  0x1e   : > { %s344_s4 = sld [smem:[#allocation3 + $0x1]] (!%p97_p0)  ;;  %s491_s13 = smov (!%p97_p0), 126  }
  0x1f   : > { %s346_s5 = sld [smem:[#allocation3 + $0x3]] (!%p97_p0)  ;;  %s492_s18 = smov (!%p97_p0), 127  }
  0x20   : > { %s351_s6 = sld [smem:[#allocation3 + $0x8]] (!%p97_p0)  ;;  %s494_s27 = smov (!%p97_p0), 124  }
  0x21   : > { %s575_s7 = sld [smem:[#allocation3]] (!%p97_p0) }
  0x22   : > { %s116_s25 = scalar_select %p115_p1, %s537_s17, 1  ;;  %vm120_vm0 = vcmask 125952   ;;  %vm139_vm1 = vcmask 23552   ;;  %vm141_vm2 = vcmask 154624  }
  0x23   : > { %s577_s8 = sld [smem:[#allocation3 + $0x7]]  ;;  %v183_v16 = vstv %s345_s3  ;;  %s112_s3 = sand.u32 1, %s479_s15  }
  0x24   : > { %s343_s26 = sshll.u32 %s116_s25, 2  ;;  %s579_s9 = sld [smem:[#allocation3 + $0x4]]  ;;  %v169_v17 = vstv %s344_s4 }
  0x25   : > { %s118_s29 = scalar_lea.vmem %s631_s1, %s343_s26  ;;  %s581_s10 = sld [smem:[#allocation3 + $0x9]]  ;;  %v197_v23 = vstv %s346_s5 }
  0x26   : > { %v569_v0 = vld [vmem:[%s118_s29] sm:$0xf]  ;;  %s585_s11 = sld [smem:[#allocation3 + $0x5]]  ;;  %v176_v24 = vstv %s351_s6  ;;  %s493_s25 = smov 125  }
  0x27   : > { %v121_v1 = vsel %vm120_vm0, %v569_v0, 0.0  ;;  %v128_v2 = vsel %vm120_vm0, %v569_v0, -inf  ;;  %s353_s12 = sld [smem:[#allocation3 + $0xa]]  ;;  %v163_v26 = vstv %s575_s7  ;;  %s495_s29 = smov 123  }
  0x28   : > { %v122_v3 = vrot.slane %v121_v1, 4  ;;  %v129_v4 = vrot.slane %v128_v2, 4  ;;  %s349_s20 = sld [smem:[#allocation3 + $0x6]]  ;;  %s342_s4 = sshll.u32 %s112_s3, 2 }
  0x29   : > { %v166_v27 = vstv %s577_s8  ;;  %s354_s21 = sld [smem:[#allocation3 + $0xb]]  ;;  %s359_s5 = sshll.u32 %s537_s17, 6 }
  0x2a   : > { %v123_v5 = vadd.f32 %v122_v3, %v121_v1  ;;  %v130_v6 = vmax.f32 %v128_v2, %v129_v4  ;;  %v211_v31 = vstv %s579_s9  ;;  %s355_s26 = sld [smem:[#allocation3 + $0xc]]  ;;  %s114_s6 = scalar_lea.vmem [#allocation4], %s342_s4 }
  0x2b   : > { %v190_v32 = vstv %s581_s10  ;;  %s356_s28 = sld [smem:[#allocation3 + $0xd]]  ;;  %s279_s7 = sshll.u32 %s114_s6, 4  ;;  %s280_s7 = int_to_ptr.vmem [resolvable:$true] %s279_s7 }
  0x2c   : > { %v124_v7 = vrot.slane %v123_v5, 2  ;;  %v131_v8 = vrot.slane %v130_v6, 2  ;;  %v225_v38 = vstv %s585_s11  ;;  %s277_s10 = scalar_lea.hbm %s632_s2, %s359_s5  ;;  %s266_s11 = scalar_lea.sflag [#allocation5], %s112_s3 }
  0x2d   : > { %v204_v39 = vstv %s353_s12  ;;  %s425_s12 = scalar_lea.vmem %s280_s7, 64 }
  0x2e   : > { %v125_v9 = vadd.f32 %v124_v7, %v123_v5  ;;  %v132_v10 = vmax.f32 %v130_v6, %v131_v8  ;;  %v239_v42 = vstv %s349_s20  ;;  %p426_p2 = scmp.ne.s32.totalorder %s280_s7, %s425_s12 }
  0x2f   : > { %v218_v43 = vstv %s354_s21 }
  0x30   : > { %v126_v11 = vrot.slane %v125_v9, 1  ;;  %v133_v12 = vrot.slane %v132_v10, 1  ;;  %v232_v46 = vstv %s355_s26  ;;  %p427_p3 = pnand %p426_p2, %p554_p10 }
  0x31   : > { %v246_v48 = vstv %s356_s28 }
  0x32   : > { %v127_v13 = vadd.f32 %v126_v11, %v125_v9  ;;  %v134_v14 = vmax.f32 %v132_v10, %v133_v12  ;;  %p428_p4 = pneg %p427_p3 }
  0x34   : > { %136 = vrot.lane.b32.xlu0 %v127_v13, %s490_s30 }
  0x38   : > { %144 = vrot.lane.b32.xlu0 %v134_v14, %s490_s30  ;;  %s496_s30 = smov 122   ;;  %v259_v14 = vlaneseq }
  0xa6   : > { %v137_v15 = vpop.permute.xlu0 %136 }
  0xa7   : > { %v140_v18 = vsel %vm139_vm1, 0.0, %v137_v15  ;;  %v260_v15 = vshrl.u32 %v259_v14, 7 }
  0xa8   : > { %v142_v19 = vsel %vm141_vm2, %v140_v18, 0.0 }
  0xa9   : > { %v184_v20 = vmul.f32 %v183_v16, %v142_v19  ;;  %v170_v21 = vmul.f32 %v169_v17, %v142_v19  ;;  %v198_v29 = vmul.f32 %v197_v23, %v142_v19  ;;  %v164_v33 = vmul.f32 %v163_v26, %v142_v19 }
  0xaa   : > { %v145_v22 = vpop.permute.xlu0 %144  ;;  %v212_v36 = vmul.f32 %v211_v31, %v142_v19  ;;  %v226_v40 = vmul.f32 %v225_v38, %v142_v19  ;;  %v240_v44 = vmul.f32 %v239_v42, %v142_v19  ;;  %v261_v16 = vsub.s32 0, %v260_v15 }
  0xab   : > { %v147_v25 = vsel %vm139_vm1, 0.0, %v145_v22  ;;  %186 = vrot.lane.b32.xlu0 %v184_v20, %s491_s13  ;;  %172 = vrot.lane.b32.xlu1 %v170_v21, %s492_s18 }
  0xac   : > { %v148_v28 = vsel %vm141_vm2, %v147_v25, 0.0 }
  0xad   : > { %v177_v30 = vmul.f32 %v176_v24, %v148_v28  ;;  %v167_v34 = vmul.f32 %v166_v27, %v148_v28  ;;  %v191_v37 = vmul.f32 %v190_v32, %v148_v28  ;;  %v205_v41 = vmul.f32 %v204_v39, %v148_v28 }
  0xae   : > { %v219_v45 = vmul.f32 %v218_v43, %v148_v28  ;;  %v233_v47 = vmul.f32 %v232_v46, %v148_v28  ;;  %v247_v49 = vmul.f32 %v246_v48, %v148_v28 }
  0xaf   : > { %200 = vrot.lane.b32.xlu0 %v198_v29, %s493_s25  ;;  %179 = vrot.lane.b32.xlu1 %v177_v30, %s492_s18  ;;  %v168_v35 = vadd.f32 %v167_v34, %v164_v33 }
  0xb3   : > { %214 = vrot.lane.b32.xlu0 %v212_v36, %s494_s27  ;;  %193 = vrot.lane.b32.xlu1 %v191_v37, %s491_s13  ;;  %s497_s13 = smov [#allocation4]  }
  0xb4   : > { %s429_s17 = sshll.u32 %s497_s13, 4  ;;  %s430_s17 = int_to_ptr.vmem [resolvable:$false] %s429_s17 }
  0xb5   : > { %s431_s18 = scalar_lea.vmem %s430_s17, 128  ;;  %p432_p5 = scmp.lt.s32.totalorder %s280_s7, %s430_s17 }
  0xb6   : > { %p433_p6 = scmp.lt.s32.totalorder %s431_s18, %s425_s12 }
  0xb7   : > { %228 = vrot.lane.b32.xlu0 %v226_v40, %s495_s29  ;;  %207 = vrot.lane.b32.xlu1 %v205_v41, %s493_s25 }
  0xb8   : > { %p434_p7 = por %p433_p6, %p432_p5 }
  0xba   : > { %p435_p8 = pnand %p434_p7, %p428_p4 }
  0xbb   : > { %242 = vrot.lane.b32.xlu0 %v240_v44, %s496_s30  ;;  %221 = vrot.lane.b32.xlu1 %v219_v45, %s494_s27 }
  0xbf   : > { %235 = vrot.lane.b32.xlu1 %v233_v47, %s495_s29 }
  0xc3   : > { %249 = vrot.lane.b32.xlu1 %v247_v49, %s496_s30 }
 0x11d   : > { %v173_v50 = vpop.permute.xlu1 %172  ;;  %v187_v51 = vpop.permute.xlu0 %186 }
 0x11e   : > { %v175_v52 = vadd.f32 %v173_v50, %v168_v35 }
 0x121   : > { %v180_v53 = vpop.permute.xlu1 %179  ;;  %v201_v54 = vpop.permute.xlu0 %200 }
 0x122   : > { %v182_v55 = vadd.f32 %v180_v53, %v175_v52 }
 0x124   : > { %v189_v56 = vadd.f32 %v187_v51, %v182_v55 }
 0x125   : > { %v194_v57 = vpop.permute.xlu1 %193  ;;  %v215_v59 = vpop.permute.xlu0 %214 }
 0x126   : > { %v196_v58 = vadd.f32 %v194_v57, %v189_v56 }
 0x128   : > { %v203_v60 = vadd.f32 %v201_v54, %v196_v58 }
 0x129   : > { %v208_v61 = vpop.permute.xlu1 %207  ;;  %v229_v1 = vpop.permute.xlu0 %228 }
 0x12a   : > { %v210_v62 = vadd.f32 %v208_v61, %v203_v60 }
 0x12c   : > { %v217_v63 = vadd.f32 %v215_v59, %v210_v62 }
 0x12d   : > { %v222_v2 = vpop.permute.xlu1 %221  ;;  %v243_v7 = vpop.permute.xlu0 %242 }
 0x12e   : > { %v224_v3 = vadd.f32 %v222_v2, %v217_v63 }
 0x130   : > { %v231_v4 = vadd.f32 %v229_v1, %v224_v3 }
 0x131   : > { %v236_v5 = vpop.permute.xlu1 %235 }
 0x132   : > { %v238_v6 = vadd.f32 %v236_v5, %v231_v4 }
 0x134   : > { %v245_v8 = vadd.f32 %v243_v7, %v238_v6 }
 0x135   : > { %v250_v9 = vpop.permute.xlu1 %249 }
 0x136   : > { %v252_v10 = vadd.f32 %v250_v9, %v245_v8 }
 0x138   : > { %v357_v11 = vmul.f32 -1.442695, %v252_v10 }
 0x13a   : > { %409 = vpow2.f32 %v357_v11 }
 0x147   : > { %v410_v12 = vpop.eup %409 }
 0x148   : > { %v256_v13 = vadd.f32 1.0, %v410_v12 }
 0x14a   : > { %411 = vrcp.f32 %v256_v13 }
 0x157   : > { %v412_v17 = vpop.eup %411 }
 0x158   : > { %v262_v18 = vrot.slane %v412_v17, %v261_v16 }
 0x15a   : > { %v263_v19 = vmul.f32 %v262_v18, %v569_v0 }
 0x15c   : > { %264 = vst.msk [vmem:[%s114_s6] sm:$0xf] %vm120_vm0, %v263_v19 }
 0x15d   : > { %438 = shalt.err (!%p435_p8)
}
 0x15e   : > { %s439_s20 = scalar_lea.hbm %s277_s10, 64  ;;  %s443_s26 = scalar_lea.hbm %s632_s2, 128 }
 0x15f   : > { %p440_p9 = scmp.ne.s32.totalorder %s277_s10, %s439_s20  ;;  %p444_p0 = scmp.lt.s32.totalorder %s277_s10, %s632_s2 }
 0x160   : > { %p445_p1 = scmp.lt.s32.totalorder %s443_s26, %s439_s20 }
 0x161   : > { %p441_p12 = pnand %p440_p9, %p554_p10 }
 0x162   : > { %p446_p2 = por %p445_p1, %p444_p0 }
 0x163   : > { %p442_p13 = pneg %p441_p12 }
 0x165   : > { %p447_p3 = pnand %p446_p2, %p442_p13 }
 0x167   : > { %450 = shalt.err (!%p447_p3)
}
 0x168   : > { %362 = dma.vmem_to_hbm [thread:$0]  (%p554_p10), %s280_s7, 64, %s277_s10, %s266_s11  }
 0x169 PF: > { %p368_p4 = scmp.ge.s32.totalorder %s487_s16, 2  ;;  %s291_s29 = sand.u32 1, %s475_s14  }
 0x16a   : > { %s292_s30 = scalar_lea.sflag [#allocation5], %s291_s29 }
 0x16b   : > { %p365_p5 = pnand %p368_p4, %p558_p11 }
 0x16d   : > { %p366_p6 = pneg %p365_p5 }
 0x16f   : > { %470 = dma.done.wait (%p366_p6), %s292_s30, 64  }
 0x170   : > { %472 = vsyncadd (%p366_p6), %s292_s30, 4294967232  ;;  %p18_p7 = scmp.ge.s32.totalorder %s541_s19, 4   ;;  %s635_s14 = smov %s479_s15 }
 0x171   : > { %s636_s15 = smov %s483_s0  ;;  %s637_s0 = smov %s552_s22 }
 0x172   : > { %s638_s16 = smov %s541_s19  ;;  %20 = sbr.rel (!%p18_p7) target bundleno = 18 (0x12), region = 59 }
 0x177   :  { %297 = vsyncpa [#allocation5], 1 }
 0x178   :  { %299 = vsyncpa [#allocation5 + $0x1], 1 }

</bundles_post_ra>
